<compile_context>
chip_gen: v7x
topology: tpu7x:2x2x1
jax: 0.10.0
libtpu: 0.0.40
codegen_flags: <defaults>
</compile_context>

<pallas_src>
import functools
import math

import jax
import jax.numpy as jnp
from jax.experimental import pallas as pl
from jax.experimental.pallas import tpu as pltpu


# ============================================================================
# Kernel 1: hoisted input-side conv  gx = im2col(x) @ Wx + bias
# (one large, fully parallel, MXU-shaped GEMM over all (B, T, H, W) positions)
# ============================================================================
def _gates_x_kernel(a_ref, w_ref, b_ref, o_ref):
    # a: (TM, K) bf16 im2col rows, w: (K, 4Ch) bf16, b: (1, 4Ch) f32
    o_ref[...] = (
        jnp.dot(a_ref[...], w_ref[...], preferred_element_type=jnp.float32)
        + b_ref[...])


def _gates_from_x(patches, w_mat, bias, *, tm=512):
    """(M, K) bf16 @ (K, N) bf16 + (1, N) f32 -> (M, N) f32 via Pallas."""
    M, K = patches.shape
    N = w_mat.shape[1]
    m_pad = pl.cdiv(M, tm) * tm
    if m_pad != M:
        patches = jnp.pad(patches, ((0, m_pad - M), (0, 0)))
    out = pl.pallas_call(
        _gates_x_kernel,
        out_shape=jax.ShapeDtypeStruct((m_pad, N), jnp.float32),
        grid_spec=pltpu.PrefetchScalarGridSpec(
            num_scalar_prefetch=0,
            grid=(m_pad // tm,),
            in_specs=[
                pl.BlockSpec((tm, K), lambda i: (i, 0)),
                pl.BlockSpec((K, N), lambda i: (0, 0)),
                pl.BlockSpec((1, N), lambda i: (0, 0)),
            ],
            out_specs=pl.BlockSpec((tm, N), lambda i: (i, 0)),
        ),
        compiler_params=pltpu.CompilerParams(
            dimension_semantics=("parallel",)),
    )(patches, w_mat, bias)
    return out[:M]


# ============================================================================
# Kernel 2: fused ConvLSTM recurrence for one layer (all timesteps).
# ============================================================================
def _layer_kernel(gx_ref, h0_ref, c0_ref, mask_ref, wh_ref,
                  hseq_ref, c_ref, hpad_ref,
                  *, H, W, Wp, Ch, kh, kw, lead, off):
    """Grid = (batch, time); time is the carried ("arbitrary") axis.

    gx_ref   : (1, 1, H*Wp, 4Ch) f32   hoisted conv(x_t, Wx) + bias
    h0_ref   : (1, ROWS, Ch)     f32   zero-padded initial hidden state
    c0_ref   : (1, H*Wp, Ch)     f32   initial cell state (row-major, width Wp)
    mask_ref : (H*Wp, 1)         f32   1.0 on valid columns, 0.0 on wrap cols
    wh_ref   : (kh*kw, Ch, 4Ch)  bf16  conv weights (hidden part)
    hseq_ref : (1, 1, H*Wp, Ch)  bf16  per-timestep hidden output
    c_ref    : (1, H*Wp, Ch)     f32   cell state (accumulator across t)
    hpad_ref : (ROWS, Ch)        f32   VMEM scratch: padded hidden state
    """
    t = pl.program_id(1)
    HWp = H * Wp

    # First timestep of this batch element: load initial (padded) h and c.
    @pl.when(t == 0)
    def _init():
        hpad_ref[...] = h0_ref[0]
        c_ref[0] = c0_ref[0]

    # Gate pre-activations: start from the hoisted input conv (bias already
    # folded in) and add conv(h, Wh) as kh*kw shifted-window matmuls over the
    # flattened zero-halo-padded hidden frame.  Accumulate in registers — no
    # per-tap VMEM read-modify-write of the accumulator.
    acc = gx_ref[0, 0]
    for dy in range(kh):
        for dx in range(kw):
            k = dy * kw + dx
            s = lead + dy * Wp + dx                    # static window start
            hs = hpad_ref[s:s + HWp, :].astype(jnp.bfloat16)
            acc = acc + jnp.dot(hs, wh_ref[k],
                                preferred_element_type=jnp.float32)

    def _sigmoid(v):                                   # one EUP op per call
        return 0.5 * jnp.tanh(0.5 * v) + 0.5

    # gate order matches torch.split: i, f, o, g
    i = _sigmoid(acc[:, 0 * Ch:1 * Ch])
    f = _sigmoid(acc[:, 1 * Ch:2 * Ch])
    o = _sigmoid(acc[:, 2 * Ch:3 * Ch])
    g = jnp.tanh(acc[:, 3 * Ch:4 * Ch])

    c_next = f * c_ref[0] + i * g
    h_next = o * jnp.tanh(c_next)
    c_ref[0] = c_next

    # Zero the wrap columns with the hoisted mask; the single contiguous store
    # into the padded scratch then writes valid values into the interior and
    # zeros exactly onto the halo positions (halo never has to be re-zeroed).
    h_masked = h_next * mask_ref[...]
    hpad_ref[off:off + HWp, :] = h_masked
    # Emit only the interior rows of this timestep's hidden state, in bf16.
    hseq_ref[0, 0] = h_masked.astype(jnp.bfloat16)


def _conv_lstm_layer(gx, h0_pad, c0, mask, wh, *, H, W, kh, kw, lead):
    B, T, HWp, G = gx.shape
    Ch = wh.shape[1]
    ph, pw = kh // 2, kw // 2
    Wp = W + 2 * pw
    ROWS = h0_pad.shape[1]
    KK = kh * kw
    off = lead + ph * Wp + pw            # multiple of 8 by construction

    kernel = functools.partial(_layer_kernel, H=H, W=W, Wp=Wp, Ch=Ch,
                               kh=kh, kw=kw, lead=lead, off=off)

    hseq, c_last = pl.pallas_call(
        kernel,
        out_shape=(jax.ShapeDtypeStruct((B, T, HWp, Ch), jnp.bfloat16),
                   jax.ShapeDtypeStruct((B, HWp, Ch), jnp.float32)),
        grid_spec=pltpu.PrefetchScalarGridSpec(
            num_scalar_prefetch=0,
            grid=(B, T),
            in_specs=[
                pl.BlockSpec((1, 1, HWp, G), lambda b, t: (b, t, 0, 0)),
                pl.BlockSpec((1, ROWS, Ch), lambda b, t: (b, 0, 0)),
                pl.BlockSpec((1, HWp, Ch), lambda b, t: (b, 0, 0)),
                pl.BlockSpec((HWp, 1), lambda b, t: (0, 0)),
                pl.BlockSpec((KK, Ch, G), lambda b, t: (0, 0, 0)),
            ],
            out_specs=[
                pl.BlockSpec((1, 1, HWp, Ch), lambda b, t: (b, t, 0, 0)),
                pl.BlockSpec((1, HWp, Ch), lambda b, t: (b, 0, 0)),
            ],
            scratch_shapes=[
                pltpu.VMEM((ROWS, Ch), jnp.float32),   # padded hidden state
            ],
        ),
        compiler_params=pltpu.CompilerParams(
            dimension_semantics=("parallel", "arbitrary")),
    )(gx, h0_pad, c0, mask, wh)
    return hseq, c_last


# ============================================================================
# Layout helpers (plain JAX, run once per layer / once per forward).
# ============================================================================
def _pad_frames(x, ph, pw, lead):
    """(..., H, W, C) -> (..., ROWS, C): 'same' halo + 1 safety row + `lead`
    alignment rows, rows flattened."""
    *lead_dims, H, W, C = x.shape
    xp = jnp.pad(x, [(0, 0)] * len(lead_dims) + [(ph, ph + 1), (pw, pw), (0, 0)])
    Hp1, Wp = H + 2 * ph + 1, W + 2 * pw
    xp = xp.reshape(tuple(lead_dims) + (Hp1 * Wp, C))
    xp = jnp.pad(xp, [(0, 0)] * len(lead_dims) + [(lead, 0), (0, 0)])
    return xp


def _pack_c(c_nhwc, pw):
    """(B, H, W, C) -> (B, H*Wp, C) with zero wrap columns."""
    B, H, W, C = c_nhwc.shape
    cp = jnp.pad(c_nhwc, ((0, 0), (0, 0), (0, 2 * pw), (0, 0)))
    return cp.reshape(B, H * (W + 2 * pw), C)


def _unpack_c(c, H, W, pw):
    """(B, H*Wp, C) -> (B, H, W, C)."""
    B, _, C = c.shape
    Wp = W + 2 * pw
    return c.reshape(B, H, Wp, C)[:, :, :W, :]


def _im2col(x, kh, kw):
    """(B, T, H, W, C) -> (B*T*H*W, kh*kw*C) 'same'-conv patches, tap-major."""
    B, T, H, W, C = x.shape
    ph, pw = kh // 2, kw // 2
    xp = jnp.pad(x, ((0, 0), (0, 0), (ph, ph), (pw, pw), (0, 0)))
    taps = [xp[:, :, dy:dy + H, dx:dx + W, :]
            for dy in range(kh) for dx in range(kw)]
    patches = jnp.concatenate(taps, axis=-1)
    return patches.reshape(B * T * H * W, kh * kw * C)


# ============================================================================
# Module-level wrapper mirroring the PyTorch ConvLSTM forward pass.
# ============================================================================
class ConvLSTMPallas:
    """JAX/Pallas equivalent of the PyTorch ConvLSTM module's forward pass."""

    def __init__(self, input_dim, hidden_dim, kernel_size, num_layers,
                 batch_first=False, bias=True, return_all_layers=False,
                 key=None):
        kernel_size = self._extend(kernel_size, num_layers)
        hidden_dim = self._extend(hidden_dim, num_layers)
        assert len(kernel_size) == len(hidden_dim) == num_layers
        for kh, kw in kernel_size:
            # TODO(synk): even kernel sizes change the spatial size in the
            # PyTorch module too; only odd ("same") kernels are supported here.
            assert kh % 2 == 1 and kw % 2 == 1, "only odd kernel sizes supported"
        self.input_dim = input_dim
        self.hidden_dim = hidden_dim
        self.kernel_size = kernel_size
        self.num_layers = num_layers
        self.batch_first = batch_first
        self.bias = bias
        self.return_all_layers = return_all_layers

        if key is None:
            key = jax.random.PRNGKey(0)

        # Deterministic in-script parameter init (PyTorch Conv2d-style uniform).
        # Weights stored bf16 for the MXU, bias f32.
        #   wx_mat : (kh*kw*Cin, 4Ch)  — input-conv weights for the im2col GEMM
        #   wh     : (kh*kw, Ch, 4Ch)  — hidden-conv weights for the tap loop
        self.params = []
        for li in range(num_layers):
            cur_in = input_dim if li == 0 else hidden_dim[li - 1]
            hd = hidden_dim[li]
            kh, kw = kernel_size[li]
            fan_in = (cur_in + hd) * kh * kw
            bound = 1.0 / math.sqrt(fan_in)
            key, wkey, bkey = jax.random.split(key, 3)
            w = jax.random.uniform(wkey, (kh, kw, cur_in + hd, 4 * hd),
                                   jnp.float32, -bound, bound)
            wx_mat = w[:, :, :cur_in, :].reshape(kh * kw * cur_in, 4 * hd)
            wh = w[:, :, cur_in:, :].reshape(kh * kw, hd, 4 * hd)
            if bias:
                b = jax.random.uniform(bkey, (1, 4 * hd), jnp.float32,
                                       -bound, bound)
            else:
                b = jnp.zeros((1, 4 * hd), jnp.float32)
            self.params.append((wx_mat.astype(jnp.bfloat16),
                                wh.astype(jnp.bfloat16), b))

    @staticmethod
    def _extend(param, num_layers):
        if not isinstance(param, list):
            param = [param] * num_layers
        return param

    def __call__(self, input_tensor, hidden_state=None):
        # input_tensor: (B,T,C,H,W) if batch_first else (T,B,C,H,W)  (NCHW frames)
        if not self.batch_first:
            input_tensor = jnp.transpose(input_tensor, (1, 0, 2, 3, 4))
        b, t, c, hh, ww = input_tensor.shape

        if hidden_state is not None:
            if len(hidden_state) != self.num_layers:
                raise ValueError("wrong number of hidden-state layers")
            if hidden_state[0][0].shape[0] != b:
                raise ValueError("hidden state batch size mismatch")

        # internal NHWC, bf16 (it only feeds the bf16 im2col pre-GEMM).
        cur = jnp.transpose(input_tensor, (0, 1, 3, 4, 2)).astype(jnp.bfloat16)

        layer_output_list = []
        last_state_list = []

        for li in range(self.num_layers):
            kh, kw = self.kernel_size[li]
            ph, pw = kh // 2, kw // 2
            wp = ww + 2 * pw
            hwp = hh * wp
            lead = (-(ph * wp + pw)) % 8        # align interior write to sublanes
            hd = self.hidden_dim[li]
            wx_mat, wh, bias = self.params[li]

            # ---- hoisted input-side conv over all (B, T): one big GEMM ----
            patches = _im2col(cur, kh, kw)                     # (B*T*H*W, K) bf16
            gx_flat = _gates_from_x(patches, wx_mat, bias)     # (B*T*H*W, 4hd) f32
            gx = gx_flat.reshape(b, t, hh, ww, 4 * hd)
            gx = jnp.pad(gx, ((0, 0), (0, 0), (0, 0), (0, 2 * pw), (0, 0)))
            gx = gx.reshape(b, t, hwp, 4 * hd)

            # ---- initial state (zeros, like the PyTorch init_hidden) ----
            if hidden_state is None:
                h0 = jnp.zeros((b, hh, ww, hd), jnp.float32)
                c0 = jnp.zeros((b, hh, ww, hd), jnp.float32)
            else:
                h0_nchw, c0_nchw = hidden_state[li]
                h0 = jnp.transpose(h0_nchw, (0, 2, 3, 1)).astype(jnp.float32)
                c0 = jnp.transpose(c0_nchw, (0, 2, 3, 1)).astype(jnp.float32)
            h0_pad = _pad_frames(h0, ph, pw, lead)             # (B, ROWS, hd)
            c0_pack = _pack_c(c0, pw)                          # (B, H*Wp, hd)

            # ---- hoisted wrap-column mask (loop-invariant) ----
            colmask = (jnp.arange(hwp, dtype=jnp.int32) % wp) < ww
            mask = colmask.astype(jnp.float32).reshape(hwp, 1)

            hseq, c_last = _conv_lstm_layer(
                gx, h0_pad, c0_pack, mask, wh,
                H=hh, W=ww, kh=kh, kw=kw, lead=lead)

            # hseq: (B, T, H*Wp, hd) bf16 -> (B, T, H, W, hd) bf16
            h_seq_hw = hseq.reshape(b, t, hh, wp, hd)[:, :, :, :ww, :]
            cur = h_seq_hw                                     # next layer input

            layer_out = jnp.transpose(h_seq_hw.astype(jnp.float32),
                                      (0, 1, 4, 2, 3))         # (B,T,Ch,H,W)
            layer_output_list.append(layer_out)
            h_last = layer_out[:, -1]
            c_last_nchw = jnp.transpose(_unpack_c(c_last, hh, ww, pw),
                                        (0, 3, 1, 2))
            last_state_list.append([h_last, c_last_nchw])

        if not self.return_all_layers:
            layer_output_list = layer_output_list[-1:]
            last_state_list = last_state_list[-1:]
        return layer_output_list, last_state_list


# ============================================================================
# Pure-JAX reference (same bf16 weights) for a numerical sanity check.
# ============================================================================
def _reference_forward(model, x):
    B, T, C, H, W = x.shape
    cur = jnp.transpose(x, (0, 1, 3, 4, 2)).astype(jnp.float32)
    h = c_state = None
    for li in range(model.num_layers):
        wx_mat, wh, bias = model.params[li]
        kh, kw = model.kernel_size[li]
        Ch = wh.shape[1]
        Cin = wx_mat.shape[0] // (kh * kw)
        w = jnp.concatenate(
            [wx_mat.astype(jnp.float32).reshape(kh, kw, Cin, 4 * Ch),
             wh.astype(jnp.float32).reshape(kh, kw, Ch, 4 * Ch)], axis=2)
        bvec = bias.astype(jnp.float32).reshape(4 * Ch)
        h = jnp.zeros((B, H, W, Ch), jnp.float32)
        c_state = jnp.zeros((B, H, W, Ch), jnp.float32)
        outs = []
        for ti in range(T):
            comb = jnp.concatenate([cur[:, ti], h], axis=-1)
            conv = jax.lax.conv_general_dilated(
                comb, w, window_strides=(1, 1), padding="SAME",
                dimension_numbers=("NHWC", "HWIO", "NHWC"),
                precision=jax.lax.Precision.HIGHEST) + bvec
            i = jax.nn.sigmoid(conv[..., 0 * Ch:1 * Ch])
            f = jax.nn.sigmoid(conv[..., 1 * Ch:2 * Ch])
            o = jax.nn.sigmoid(conv[..., 2 * Ch:3 * Ch])
            g = jnp.tanh(conv[..., 3 * Ch:4 * Ch])
            c_state = f * c_state + i * g
            h = o * jnp.tanh(c_state)
            outs.append(h)
        cur = jnp.stack(outs, axis=1)
    out = jnp.transpose(cur, (0, 1, 4, 2, 3))
    return (out, jnp.transpose(h, (0, 3, 1, 2)),
            jnp.transpose(c_state, (0, 3, 1, 2)))


if __name__ == "__main__":
    key = jax.random.PRNGKey(0)
    kx, kp = jax.random.split(key)

    B, T, C, H, W = 2, 8, 4, 16, 16
    hidden = 32
    x = jax.random.normal(kx, (B, T, C, H, W), jnp.float32)

    model = ConvLSTMPallas(input_dim=C, hidden_dim=hidden, kernel_size=(3, 3),
                           num_layers=2, batch_first=True, bias=True,
                           return_all_layers=False, key=kp)

    layer_output_list, last_state_list = model(x)
    out = layer_output_list[0]
    h_last, c_last = last_state_list[0]
    jax.block_until_ready(out)
    jax.block_until_ready(h_last)
    jax.block_until_ready(c_last)

    assert out.shape == (B, T, hidden, H, W)
    assert h_last.shape == (B, hidden, H, W)
    assert c_last.shape == (B, hidden, H, W)

    # Sanity check vs a pure-JAX f32 reference using the same bf16 weights.
    # Tolerance covers the documented bf16 MXU-input / bf16 h-output drift.
    ref_out, ref_h, ref_c = _reference_forward(model, x)
    assert float(jnp.max(jnp.abs(out - ref_out))) < 0.1
    assert float(jnp.max(jnp.abs(h_last - ref_h))) < 0.1
    assert float(jnp.max(jnp.abs(c_last - ref_c))) < 0.1

    print("KERNEL_OK")
</pallas_src>

<mosaic_0001>
module attributes {stable_mosaic.version = 11 : i64} {
  func.func @_gates_x_kernel(%arg0: i32, %arg1: memref<512x36xbf16, #tpu.memory_space<vmem>>, %arg2: memref<36x128xbf16, #tpu.memory_space<vmem>>, %arg3: memref<1x128xf32, #tpu.memory_space<vmem>>, %arg4: memref<512x128xf32, #tpu.memory_space<vmem>>) attributes {dimension_semantics = [#tpu.dimension_semantics<parallel>], iteration_bounds = array<i64: 8>, scalar_prefetch = 0 : i64, scratch_operands = 0 : i64, tpu.core_type = #tpu.core_type<tc>, window_params = [{transform_indices = @transform_0, window_bounds = array<i64: 512, 36>}, {pipeline_mode = #tpu.pipeline_mode<synchronous>, transform_indices = @transform_1, window_bounds = array<i64: 36, 128>}, {pipeline_mode = #tpu.pipeline_mode<synchronous>, transform_indices = @transform_2, window_bounds = array<i64: 1, 128>}, {transform_indices = @transform_3, window_bounds = array<i64: 512, 128>}]} {
    %c0 = arith.constant 0 : index
    %c0_0 = arith.constant 0 : index
    %0 = vector.load %arg1[%c0, %c0_0] : memref<512x36xbf16, #tpu.memory_space<vmem>>, vector<512x36xbf16>
    %c0_1 = arith.constant 0 : index
    %c0_2 = arith.constant 0 : index
    %1 = vector.load %arg2[%c0_1, %c0_2] : memref<36x128xbf16, #tpu.memory_space<vmem>>, vector<36x128xbf16>
    %cst = arith.constant dense<0.000000e+00> : vector<512x128xf32>
    %2 = tpu.matmul %0, %1, %cst {dimension_numbers = #tpu.dot_dimension_numbers<[1], [0], [0], [1], [0, 0, 1, 1], [], []>} : vector<512x36xbf16>, vector<36x128xbf16>, vector<512x128xf32> -> vector<512x128xf32>
    %c0_3 = arith.constant 0 : index
    %c0_4 = arith.constant 0 : index
    %3 = vector.load %arg3[%c0_3, %c0_4] : memref<1x128xf32, #tpu.memory_space<vmem>>, vector<1x128xf32>
    %4 = vector.broadcast %3 : vector<1x128xf32> to vector<512x128xf32>
    %5 = arith.addf %2, %4 : vector<512x128xf32>
    %c0_5 = arith.constant 0 : index
    %c0_6 = arith.constant 0 : index
    %6 = vector.load %arg4[%c0_5, %c0_6] : memref<512x128xf32, #tpu.memory_space<vmem>>, vector<512x128xf32>
    tpu.vector_store %arg4[%c0_5, %c0_6], %5 {strides = array<i32>} : memref<512x128xf32, #tpu.memory_space<vmem>>, vector<512x128xf32>,
    return
  }
  func.func @transform_0(%arg0: i32) -> (i32, i32) {
    %c0_i32 = arith.constant 0 : i32
    %c0_i32_0 = arith.constant 0 : i32
    return %arg0, %c0_i32 : i32, i32
  }
  func.func @transform_1(%arg0: i32) -> (i32, i32) {
    %c0_i32 = arith.constant 0 : i32
    %c0_i32_0 = arith.constant 0 : i32
    %c0_i32_1 = arith.constant 0 : i32
    return %c0_i32, %c0_i32_0 : i32, i32
  }
  func.func @transform_2(%arg0: i32) -> (i32, i32) {
    %c0_i32 = arith.constant 0 : i32
    %c0_i32_0 = arith.constant 0 : i32
    %c0_i32_1 = arith.constant 0 : i32
    return %c0_i32, %c0_i32_0 : i32, i32
  }
  func.func @transform_3(%arg0: i32) -> (i32, i32) {
    %c0_i32 = arith.constant 0 : i32
    %c0_i32_0 = arith.constant 0 : i32
    return %arg0, %c0_i32 : i32, i32
  }
}

</mosaic_0001>

<bundles_post_ra>
// kernel: tpu_custom_call.1
= control target key start
LH: loop header
LB: loop body
LE: loop exit
PB: predicated region body
PF: predicated region fallthrough
CT: control target
= control target key end

     0   :  { %8 = vsyncpa [#allocation3], 0  ;;  %s1834_s0 = inlined_call_operand.vmem [shape: bf16[4096,36], index: 0, kind: input, shape index: {}]   ;;  %s1835_s1 = inlined_call_operand.hbm [shape: bf16[36,128], index: 1, kind: input, shape index: {}]   ;;  %s1836_s2 = inlined_call_operand.hbm [shape: f32[1,128], index: 2, kind: input, shape index: {}]   ;;  %s1837_s3 = inlined_call_operand.hbm [shape: f32[4096,128], index: 3, kind: output, shape index: {}]  }
   0x1   :  { %9 = vsyncpa [#allocation6], 0 }
   0x2   :  { %10 = vsyncpa [#allocation4], 0 }
   0x3   :  { %12 = vsyncpa [#allocation4 + $0x1], 0  ;;  %s1456_s12 = smov 0   ;;  %s1458_s13 = smov 0  }
   0x4   :  { %s1460_s14 = smov 0   ;;  %s1462_s15 = smov 0  }
   0x5 LB: > { %s1477_s16 = sadd.s32 4294967295, %s1427_s15   ;;  %s1004_s17 = sadd.s32 4294967294, %s1427_s15   ;;  %s1427_s15 = sphi %s1462_s15, %s1855_s15   ;;  %s1423_s14 = sphi %s1460_s14, %s1854_s14   ;;  %s1419_s13 = sphi %s1458_s13, %s1853_s13   ;;  %s1415_s12 = sphi %s1456_s12, %s1852_s12  }
   0x6   : > { %s1481_s18 = sadd.s32 1, %s1427_s15   ;;  %s93_s19 = sadd.s32 1, %s1423_s14 }
   0x7   : > { %s90_s20 = ssub.s32 %s1427_s15, %s1481_s18  ;;  %p103_p0 = scmp.ne.s32.totalorder %s1423_s14, %s1419_s13 }
   0x8   : > { %p91_p1 = scmp.eq.s32.totalorder %s90_s20, 0  ;;  %p104_p2 = scmp.eq.s32.totalorder %s1477_s16, 7 }
   0x9   : > { %p109_p3 = scmp.ne.s32.totalorder %s1419_s13, %s1415_s12  ;;  %p110_p4 = scmp.eq.s32.totalorder %s1004_s17, 7 }
   0xa   : > { %s1492_s21 = scalar_select %p91_p1, %s1423_s14, %s93_s19  }
   0xb   : > { %p1494_p5 = por %p104_p2, %p103_p0  ;;  %p1498_p6 = por %p110_p4, %p109_p3 }
   0xc   : > { %p1005_p7 = scmp.ge.s32.totalorder %s1427_s15, 1  ;;  %p117_p8 = scmp.lt.s32.totalorder %s1427_s15, 9 }
   0xd   : > { %s1841_s22 = scalar_select %p1494_p5, 1, 0 }
   0xe   : > { %s1842_s23 = scalar_select %p1498_p6, 1, 0 }
   0xf   : > { %p1838_p9 = scmp.eq.s32.totalorder %s1477_s16, 0  ;;  %p1505_p10 = pnand %p1005_p7, %p117_p8 }
  0x10   : > { %s1429_s25 = smov [#allocation2]   ;;  %s1430_s28 = smov [#allocation5]  }
  0x11   : > { %s1843_s24 = scalar_select %p1505_p10, 1, 0 }
  0x12   : > { %s129_s26 = sshll.u32 %s1429_s25, 4  ;;  %p1212_p11 = pneg %p1505_p10  ;;  %s130_s26 = int_to_ptr.vmem [resolvable:$true] %s129_s26 }
  0x13   : > { %s143_s29 = sshll.u32 %s1430_s28, 4  ;;  %s1301_s5 = scalar_lea.hbm %s1835_s1, 320  ;;  %s1517_s29 = int_to_ptr.vmem [resolvable:$true] %s143_s29 }
  0x14   : > { %p1513_p12 = pnand %p1838_p9, %p1212_p11  ;;  %p1302_p13 = scmp.ne.s32.totalorder %s1835_s1, %s1301_s5 }
  0x15   : > { %p1308_p3 = scmp.lt.u32.totalorder %s1301_s5, %s1835_s1 }
  0x16   : > { %p1303_p0 = pneg %p1513_p12 }
  0x18   : > { %p1304_p1 = pnand %p1303_p0, %p1302_p13 }
  0x1a   : > { %p1305_p2 = pneg %p1304_p1 }
  0x1c   : > { %p1310_p4 = pnand %p1308_p3, %p1305_p2 }
  0x1e   : > { %1313 = shalt.err (!%p1310_p4)
}
  0x1f   : > { %s1314_s10 = scalar_lea.vmem %s130_s26, 320  ;;  %p1322_p9 = scmp.lt.s32.totalorder %s130_s26, %s130_s26 }
  0x20   : > { %p1315_p7 = scmp.ne.s32.totalorder %s130_s26, %s1314_s10  ;;  %p1323_p6 = scmp.lt.s32.totalorder %s1314_s10, %s1314_s10 }
  0x22   : > { %p1317_p8 = pnand %p1315_p7, %p1303_p0  ;;  %p1324_p5 = por %p1323_p6, %p1322_p9 }
  0x24   : > { %p1318_p11 = pneg %p1317_p8 }
  0x26   : > { %p1325_p10 = pnand %p1324_p5, %p1318_p11 }
  0x28   : > { %1328 = shalt.err (!%p1325_p10)
}
  0x29   : > { %s1431_s11 = smov 64   ;;  %s1432_s17 = smov 4  }
  0x2a   : > { %1215 = dma.hbm_to_vmem [thread:$0]  (!%p1513_p12), %s1835_s1, 320, %s130_s26, [#allocation3], %s1431_s11, %s1431_s11, %s1432_s17  }
  0x2b   : > { %s1329_s30 = scalar_lea.hbm %s1836_s2, 16 }
  0x2c   : > { %p1330_p13 = scmp.ne.s32.totalorder %s1836_s2, %s1329_s30  ;;  %p1336_p9 = scmp.lt.u32.totalorder %s1329_s30, %s1836_s2 }
  0x2e   : > { %p1332_p5 = pnand %p1330_p13, %p1303_p0 }
  0x30   : > { %p1333_p6 = pneg %p1332_p5 }
  0x32   : > { %p1338_p10 = pnand %p1336_p9, %p1333_p6 }
  0x34   : > { %1341 = shalt.err (!%p1338_p10)
}
  0x35   : > { %s1342_s26 = scalar_lea.vmem %s1517_s29, 16  ;;  %s1349_s8 = scalar_lea.vmem %s1517_s29, 32 }
  0x36   : > { %p1343_p1 = scmp.ne.s32.totalorder %s1517_s29, %s1342_s26  ;;  %p1350_p4 = scmp.lt.s32.totalorder %s1517_s29, %s1517_s29 }
  0x37   : > { %p1351_p7 = scmp.lt.s32.totalorder %s1349_s8, %s1342_s26 }
  0x38   : > { %p1345_p2 = pnand %p1343_p1, %p1303_p0 }
  0x39   : > { %p1352_p8 = por %p1351_p7, %p1350_p4 }
  0x3a   : > { %p1346_p3 = pneg %p1345_p2 }
  0x3c   : > { %p1353_p11 = pnand %p1352_p8, %p1346_p3 }
  0x3e   : > { %1356 = shalt.err (!%p1353_p11)
}
  0x3f   : > { %1218 = dma.hbm_to_vmem [thread:$0]  (!%p1513_p12), %s1836_s2, 16, %s1517_s29, [#allocation6]  }
  0x40   : > { %p1845_p13 = scmp.ne.s32.totalorder %s1843_s24, 0 }
  0x41   : > { %p1846_p0 = scmp.eq.s32.totalorder (!%p1845_p13), %s1477_s16, 0 }
  0x42   : > { %165 = sbr.rel (%p1845_p13) target bundleno = 378 (0x17a), region = 32 }
  0x49   : > { %1402 = dma.done.wait (%p1846_p0), [#allocation3], 320   ;;  %p1847_p5 = pmov %p1846_p0 }
  0x4a   : > { %p1848_p6 = pmov %p1846_p0 }
  0x4b   : > { %1404 = vsyncadd (%p1847_p5), [#allocation3], 4294966976 }
  0x4c   : > { %1406 = dma.done.wait (%p1848_p6), [#allocation6], 16   ;;  %p1849_p9 = pmov %p1846_p0 }
  0x4d   : > { %s1013_s27 = sshll.u32 %s1477_s16, 6  ;;  %v1266_v0 = vld [vmem:[#allocation2] sm:$0xff]   ;;  %v1267_v1 = vld [vmem:[#allocation2 + $0x8] sm:$0xff]   ;;  %vm452_vm0 = vcmask 293888   ;;  %vm549_vm1 = vcmask 1041408   ;;  %s190_s19 = sand.u32 1, %s1419_s13  }
  0x4e   : > { %1408 = vsyncadd (%p1849_p9), [#allocation6], 4294967280  ;;  %p194_p10 = scmp.lt.s32.totalorder %s1013_s27, 511  ;;  %1124 = vmatprep.subr.bf16.mxu0 %v1266_v0  ;;  %1194 = vmatprep.subr.bf16.mxu1 %v1266_v0  ;;  %v1268_v2 = vld [vmem:[#allocation2 + $0x10] ss:$0 sps:$4 sm:$0x33]  }
  0x4f   : > { %1125 = vmatpush3.bf16.msra.mxu0 %v1266_v0  ;;  %1197 = vmatpush3.bf16.msra.mxu1 %v1266_v0  ;;  %v551_v5 = vsel %vm549_vm1, %v1268_v2, 0  ;;  %s1012_s20 = sshll.u32 %s190_s19, 9  ;;  %v1650_v36 = vld [vmem:[#allocation5] ss:$0 sm:$0xff]  ;;  %s1088_s28 = sshll.u32 %s1477_s16, 13 }
  0x50   : > { %s1857_s27 = smov (!%p194_p10, %s1013_s27), 511  ;;  %1126 = vmatprep.subr.bf16.mxu0 %v1267_v1  ;;  %1195 = vmatprep.subr.bf16.mxu1 %v1267_v1  ;;  %s1656_s25 = scalar_lea.vmem [#allocation7], %s1012_s20 }
  0x51   : > { %s1014_s29 = sshll.u32 %s1857_s27, 2  ;;  %s920_s30 = sshll.u32 %s1656_s25, 4  ;;  %s1781_s30 = int_to_ptr.vmem [resolvable:$true] %s920_s30 }
  0x52   : > { %s1581_s17 = scalar_lea.vmem %s1834_s0, %s1014_s29  ;;  %s1779_s5 = scalar_lea.hbm %s1837_s3, %s1088_s28 }
  0x53   : > { %v1269_v3 = vld [vmem:[%s1581_s17] sm:$0xff]   ;;  %1127 = vmatpush3.bf16.msra.mxu0 %v1267_v1  ;;  %1198 = vmatpush3.bf16.msra.mxu1 %v1267_v1  ;;  %v1271_v6 = vld [vmem:[%s1581_s17 + $0x8] sm:$0xff]   ;;  %v1273_v8 = vld [vmem:[%s1581_s17 + $0x10] sm:$0xff]   ;;  %s1793_s6 = scalar_lea.sflag [#allocation4], %s190_s19  ;;  %s1357_s7 = scalar_lea.vmem %s1781_s30, 8192 }
  0x54   : > { %v1270_v4 = vld [vmem:[%s1581_s17 + $0x80] sm:$0xff]   ;;  %1130 = vmatprep.mubr.msk.bf16.mxu0 %vm452_vm0, %v1269_v3  ;;  %1200 = vmatprep.subr.msk.bf16.mxu0 %vm549_vm1, %v1268_v2  ;;  %v1272_v7 = vld [vmem:[%s1581_s17 + $0x88] sm:$0xff]   ;;  %v1274_v9 = vld [vmem:[%s1581_s17 + $0x90] sm:$0xff]   ;;  %p1358_p12 = scmp.ne.s32.totalorder %s1781_s30, %s1357_s7  ;;  %p1850_p1 = scmp.ne.s32.totalorder %s1841_s22, 0 }
  0x55   : > { %1162 = vmatprep.mubr.msk.bf16.mxu1 %vm452_vm0, %v1270_v4  ;;  %1201 = vmatprep.subr.msk.bf16.mxu1 %vm549_vm1, %v1268_v2  ;;  %v1275_v10 = vld [vmem:[%s1581_s17 + $0x18] sm:$0xff]   ;;  %v1277_v12 = vld [vmem:[%s1581_s17 + $0x20] sm:$0xff]   ;;  %v1279_v14 = vld [vmem:[%s1581_s17 + $0x28] sm:$0xff]   ;;  %s1433_s26 = smov [#allocation7]  }
  0x56   : > { %v1276_v11 = vld [vmem:[%s1581_s17 + $0x98] sm:$0xff]   ;;  %v1278_v13 = vld [vmem:[%s1581_s17 + $0xa0] sm:$0xff]   ;;  %v1280_v15 = vld [vmem:[%s1581_s17 + $0xa8] sm:$0xff]   ;;  %p1359_p2 = pnand %p1358_p12, %p1850_p1  ;;  %s1361_s8 = sshll.u32 %s1433_s26, 4  ;;  %s1362_s8 = int_to_ptr.vmem [resolvable:$false] %s1361_s8 }
  0x57   : > { %1129 = vmatpush3.bf16.msra.mxu0 %v551_v5  ;;  %1199 = vmatpush3.bf16.msra.mxu1 %v551_v5  ;;  %v1281_v16 = vld [vmem:[%s1581_s17 + $0x30] sm:$0xff]   ;;  %v1283_v18 = vld [vmem:[%s1581_s17 + $0x38] sm:$0xff]   ;;  %v1285_v20 = vld [vmem:[%s1581_s17 + $0x40] sm:$0xff]   ;;  %s1363_s9 = scalar_lea.vmem %s1362_s8, 16384  ;;  %p1364_p4 = scmp.lt.s32.totalorder %s1781_s30, %s1362_s8 }
  0x58   : > { %v1282_v17 = vld [vmem:[%s1581_s17 + $0xb0] sm:$0xff]   ;;  %v1284_v19 = vld [vmem:[%s1581_s17 + $0xb8] sm:$0xff]   ;;  %v1286_v21 = vld [vmem:[%s1581_s17 + $0xc0] sm:$0xff]   ;;  %p1360_p3 = pneg %p1359_p2  ;;  %p1365_p7 = scmp.lt.s32.totalorder %s1363_s9, %s1357_s7 }
  0x59   : > { %v1287_v22 = vld [vmem:[%s1581_s17 + $0x48] sm:$0xff]   ;;  %v1289_v24 = vld [vmem:[%s1581_s17 + $0x50] sm:$0xff]   ;;  %v1291_v26 = vld [vmem:[%s1581_s17 + $0x58] sm:$0xff]  }
  0x5a   : > { %1131 = vmatmul.mubr.msk.bf16.vlgmr.msra.gmra.mrb[0].mxu0 %vm452_vm0, %v1271_v6  ;;  %1163 = vmatmul.mubr.msk.bf16.vlgmr.msra.gmra.mrb[0].mxu1 %vm452_vm0, %v1272_v7  ;;  %v1288_v23 = vld [vmem:[%s1581_s17 + $0xc8] sm:$0xff]   ;;  %v1290_v25 = vld [vmem:[%s1581_s17 + $0xd0] sm:$0xff]   ;;  %v1292_v27 = vld [vmem:[%s1581_s17 + $0xd8] sm:$0xff]   ;;  %p1366_p8 = por %p1365_p7, %p1364_p4 }
  0x5b   : > { %1134 = vmatprep.mubr.msk.bf16.mxu0 %vm452_vm0, %v1273_v8  ;;  %1166 = vmatprep.mubr.msk.bf16.mxu1 %vm452_vm0, %v1274_v9  ;;  %v1293_v28 = vld [vmem:[%s1581_s17 + $0x60] sm:$0xff]   ;;  %v1295_v30 = vld [vmem:[%s1581_s17 + $0x68] sm:$0xff]   ;;  %v1297_v32 = vld [vmem:[%s1581_s17 + $0x70] sm:$0xff]  }
  0x5c   : > { %v1294_v29 = vld [vmem:[%s1581_s17 + $0xe0] sm:$0xff]   ;;  %v1296_v31 = vld [vmem:[%s1581_s17 + $0xe8] sm:$0xff]   ;;  %v1298_v33 = vld [vmem:[%s1581_s17 + $0xf0] sm:$0xff]   ;;  %p1367_p11 = pnand %p1366_p8, %p1360_p3 }
  0x5d   : > { %v1299_v34 = vld [vmem:[%s1581_s17 + $0x78] sm:$0xff]  }
  0x5e   : > { %v1300_v35 = vld [vmem:[%s1581_s17 + $0xf8] sm:$0xff]  }
  0x62   : > { %1135 = vmatmul.mubr.msk.bf16.gmra.mrb[4].mxu0 %vm452_vm0, %v1275_v10  ;;  %1167 = vmatmul.mubr.msk.bf16.gmra.mrb[4].mxu1 %vm452_vm0, %v1276_v11 }
  0x63   : > { %1138 = vmatprep.mubr.msk.bf16.mxu0 %vm452_vm0, %v1277_v12  ;;  %1170 = vmatprep.mubr.msk.bf16.mxu1 %vm452_vm0, %v1278_v13 }
  0x6a   : > { %1139 = vmatmul.mubr.msk.bf16.gmra.mrb[8].mxu0 %vm452_vm0, %v1279_v14  ;;  %1171 = vmatmul.mubr.msk.bf16.gmra.mrb[8].mxu1 %vm452_vm0, %v1280_v15 }
  0x6b   : > { %1142 = vmatprep.mubr.msk.bf16.mxu0 %vm452_vm0, %v1281_v16  ;;  %1174 = vmatprep.mubr.msk.bf16.mxu1 %vm452_vm0, %v1282_v17 }
  0x72   : > { %1143 = vmatmul.mubr.msk.bf16.gmra.mrb[12].mxu0 %vm452_vm0, %v1283_v18  ;;  %1175 = vmatmul.mubr.msk.bf16.gmra.mrb[12].mxu1 %vm452_vm0, %v1284_v19 }
  0x73   : > { %1146 = vmatprep.mubr.msk.bf16.mxu0 %vm452_vm0, %v1285_v20  ;;  %1178 = vmatprep.mubr.msk.bf16.mxu1 %vm452_vm0, %v1286_v21 }
  0x7a   : > { %1147 = vmatmul.mubr.msk.bf16.gmra.mrb[16].mxu0 %vm452_vm0, %v1287_v22  ;;  %1179 = vmatmul.mubr.msk.bf16.gmra.mrb[16].mxu1 %vm452_vm0, %v1288_v23 }
  0x7b   : > { %1150 = vmatprep.mubr.msk.bf16.mxu0 %vm452_vm0, %v1289_v24  ;;  %1182 = vmatprep.mubr.msk.bf16.mxu1 %vm452_vm0, %v1290_v25 }
  0x82   : > { %1151 = vmatmul.mubr.msk.bf16.gmra.mrb[20].mxu0 %vm452_vm0, %v1291_v26  ;;  %1183 = vmatmul.mubr.msk.bf16.gmra.mrb[20].mxu1 %vm452_vm0, %v1292_v27 }
  0x83   : > { %1154 = vmatprep.mubr.msk.bf16.mxu0 %vm452_vm0, %v1293_v28  ;;  %1186 = vmatprep.mubr.msk.bf16.mxu1 %vm452_vm0, %v1294_v29 }
  0x8a   : > { %1155 = vmatmul.mubr.msk.bf16.gmra.mrb[24].mxu0 %vm452_vm0, %v1295_v30  ;;  %1187 = vmatmul.mubr.msk.bf16.gmra.mrb[24].mxu1 %vm452_vm0, %v1296_v31 }
  0x8b   : > { %1158 = vmatprep.mubr.msk.bf16.mxu0 %vm452_vm0, %v1297_v32  ;;  %1190 = vmatprep.mubr.msk.bf16.mxu1 %vm452_vm0, %v1298_v33 }
  0x92   : > { %1159 = vmatmul.mubr.msk.bf16.gmra.mrb[28].mxu0 %vm452_vm0, %v1299_v34  ;;  %1191 = vmatmul.mubr.msk.bf16.gmra.mrb[28].mxu1 %vm452_vm0, %v1300_v35 }
 0x12d   : > { %v1132_v37 = vpop.f32.mrb[0].mxu0  ;;  %v1164_v38 = vpop.f32.mrb[0].mxu1 }
 0x12e   : > { %v596_v39 = vadd.f32 %v1132_v37, %v1650_v36  ;;  %v724_v40 = vadd.f32 %v1164_v38, %v1650_v36  ;;  %v587_v41 = vpop.f32.mrb[1].mxu0  ;;  %v715_v42 = vpop.f32.mrb[1].mxu1 }
 0x12f   : > { %v588_v43 = vadd.f32 %v1650_v36, %v587_v41  ;;  %v716_v44 = vadd.f32 %v1650_v36, %v715_v42  ;;  %v1133_v45 = vpop.f32.mrb[2].mxu0  ;;  %v1165_v46 = vpop.f32.mrb[2].mxu1 }
 0x130   : > { %844 = vst [vmem:[%s1656_s25 + $0x10] sm:$0xff] %v596_v39  ;;  %876 = vst [vmem:[%s1656_s25 + $0x110] sm:$0xff] %v724_v40  ;;  %v599_v47 = vadd.f32 %v1133_v45, %v1650_v36  ;;  %v727_v48 = vadd.f32 %v1165_v46, %v1650_v36  ;;  %v590_v49 = vpop.f32.mrb[3].mxu0  ;;  %v718_v50 = vpop.f32.mrb[3].mxu1 }
 0x131   : > { %842 = vst [vmem:[%s1656_s25] sm:$0xff] %v588_v43  ;;  %874 = vst [vmem:[%s1656_s25 + $0x100] sm:$0xff] %v716_v44  ;;  %v591_v51 = vadd.f32 %v1650_v36, %v590_v49  ;;  %v719_v52 = vadd.f32 %v1650_v36, %v718_v50 }
 0x132   : > { %845 = vst [vmem:[%s1656_s25 + $0x18] sm:$0xff] %v599_v47  ;;  %877 = vst [vmem:[%s1656_s25 + $0x118] sm:$0xff] %v727_v48 }
 0x133   : > { %843 = vst [vmem:[%s1656_s25 + $0x8] sm:$0xff] %v591_v51  ;;  %875 = vst [vmem:[%s1656_s25 + $0x108] sm:$0xff] %v719_v52 }
 0x135   : > { %v1136_v53 = vpop.f32.mrb[4].mxu0  ;;  %v1168_v54 = vpop.f32.mrb[4].mxu1 }
 0x136   : > { %v612_v55 = vadd.f32 %v1136_v53, %v1650_v36  ;;  %v740_v56 = vadd.f32 %v1168_v54, %v1650_v36  ;;  %v603_v57 = vpop.f32.mrb[5].mxu0  ;;  %v731_v58 = vpop.f32.mrb[5].mxu1 }
 0x137   : > { %v604_v59 = vadd.f32 %v1650_v36, %v603_v57  ;;  %v732_v60 = vadd.f32 %v1650_v36, %v731_v58  ;;  %v1137_v61 = vpop.f32.mrb[6].mxu0  ;;  %v1169_v62 = vpop.f32.mrb[6].mxu1 }
 0x138   : > { %848 = vst [vmem:[%s1656_s25 + $0x30] sm:$0xff] %v612_v55  ;;  %880 = vst [vmem:[%s1656_s25 + $0x130] sm:$0xff] %v740_v56  ;;  %v615_v63 = vadd.f32 %v1137_v61, %v1650_v36  ;;  %v743_v0 = vadd.f32 %v1169_v62, %v1650_v36  ;;  %v606_v1 = vpop.f32.mrb[7].mxu0  ;;  %v734_v2 = vpop.f32.mrb[7].mxu1 }
 0x139   : > { %846 = vst [vmem:[%s1656_s25 + $0x20] sm:$0xff] %v604_v59  ;;  %878 = vst [vmem:[%s1656_s25 + $0x120] sm:$0xff] %v732_v60  ;;  %v607_v3 = vadd.f32 %v1650_v36, %v606_v1  ;;  %v735_v4 = vadd.f32 %v1650_v36, %v734_v2 }
 0x13a   : > { %849 = vst [vmem:[%s1656_s25 + $0x38] sm:$0xff] %v615_v63  ;;  %881 = vst [vmem:[%s1656_s25 + $0x138] sm:$0xff] %v743_v0 }
 0x13b   : > { %847 = vst [vmem:[%s1656_s25 + $0x28] sm:$0xff] %v607_v3  ;;  %879 = vst [vmem:[%s1656_s25 + $0x128] sm:$0xff] %v735_v4 }
 0x13d   : > { %v1140_v5 = vpop.f32.mrb[8].mxu0  ;;  %v1172_v6 = vpop.f32.mrb[8].mxu1 }
 0x13e   : > { %v628_v7 = vadd.f32 %v1140_v5, %v1650_v36  ;;  %v756_v8 = vadd.f32 %v1172_v6, %v1650_v36  ;;  %v619_v9 = vpop.f32.mrb[9].mxu0  ;;  %v747_v10 = vpop.f32.mrb[9].mxu1 }
 0x13f   : > { %v620_v11 = vadd.f32 %v1650_v36, %v619_v9  ;;  %v748_v12 = vadd.f32 %v1650_v36, %v747_v10  ;;  %v1141_v13 = vpop.f32.mrb[10].mxu0  ;;  %v1173_v14 = vpop.f32.mrb[10].mxu1 }
 0x140   : > { %852 = vst [vmem:[%s1656_s25 + $0x50] sm:$0xff] %v628_v7  ;;  %884 = vst [vmem:[%s1656_s25 + $0x150] sm:$0xff] %v756_v8  ;;  %v631_v15 = vadd.f32 %v1141_v13, %v1650_v36  ;;  %v759_v16 = vadd.f32 %v1173_v14, %v1650_v36  ;;  %v622_v17 = vpop.f32.mrb[11].mxu0  ;;  %v750_v18 = vpop.f32.mrb[11].mxu1 }
 0x141   : > { %850 = vst [vmem:[%s1656_s25 + $0x40] sm:$0xff] %v620_v11  ;;  %882 = vst [vmem:[%s1656_s25 + $0x140] sm:$0xff] %v748_v12  ;;  %v623_v19 = vadd.f32 %v1650_v36, %v622_v17  ;;  %v751_v20 = vadd.f32 %v1650_v36, %v750_v18 }
 0x142   : > { %853 = vst [vmem:[%s1656_s25 + $0x58] sm:$0xff] %v631_v15  ;;  %885 = vst [vmem:[%s1656_s25 + $0x158] sm:$0xff] %v759_v16 }
 0x143   : > { %851 = vst [vmem:[%s1656_s25 + $0x48] sm:$0xff] %v623_v19  ;;  %883 = vst [vmem:[%s1656_s25 + $0x148] sm:$0xff] %v751_v20 }
 0x145   : > { %v1144_v21 = vpop.f32.mrb[12].mxu0  ;;  %v1176_v22 = vpop.f32.mrb[12].mxu1 }
 0x146   : > { %v644_v23 = vadd.f32 %v1144_v21, %v1650_v36  ;;  %v772_v24 = vadd.f32 %v1176_v22, %v1650_v36  ;;  %v635_v25 = vpop.f32.mrb[13].mxu0  ;;  %v763_v26 = vpop.f32.mrb[13].mxu1 }
 0x147   : > { %v636_v27 = vadd.f32 %v1650_v36, %v635_v25  ;;  %v764_v28 = vadd.f32 %v1650_v36, %v763_v26  ;;  %v1145_v29 = vpop.f32.mrb[14].mxu0  ;;  %v1177_v30 = vpop.f32.mrb[14].mxu1 }
 0x148   : > { %856 = vst [vmem:[%s1656_s25 + $0x70] sm:$0xff] %v644_v23  ;;  %888 = vst [vmem:[%s1656_s25 + $0x170] sm:$0xff] %v772_v24  ;;  %v647_v31 = vadd.f32 %v1145_v29, %v1650_v36  ;;  %v775_v32 = vadd.f32 %v1177_v30, %v1650_v36  ;;  %v638_v33 = vpop.f32.mrb[15].mxu0  ;;  %v766_v34 = vpop.f32.mrb[15].mxu1 }
 0x149   : > { %854 = vst [vmem:[%s1656_s25 + $0x60] sm:$0xff] %v636_v27  ;;  %886 = vst [vmem:[%s1656_s25 + $0x160] sm:$0xff] %v764_v28  ;;  %v639_v35 = vadd.f32 %v1650_v36, %v638_v33  ;;  %v767_v37 = vadd.f32 %v1650_v36, %v766_v34 }
 0x14a   : > { %857 = vst [vmem:[%s1656_s25 + $0x78] sm:$0xff] %v647_v31  ;;  %889 = vst [vmem:[%s1656_s25 + $0x178] sm:$0xff] %v775_v32 }
 0x14b   : > { %855 = vst [vmem:[%s1656_s25 + $0x68] sm:$0xff] %v639_v35  ;;  %887 = vst [vmem:[%s1656_s25 + $0x168] sm:$0xff] %v767_v37 }
 0x14d   : > { %v1148_v38 = vpop.f32.mrb[16].mxu0  ;;  %v1180_v39 = vpop.f32.mrb[16].mxu1 }
 0x14e   : > { %v660_v40 = vadd.f32 %v1148_v38, %v1650_v36  ;;  %v788_v41 = vadd.f32 %v1180_v39, %v1650_v36  ;;  %v651_v42 = vpop.f32.mrb[17].mxu0  ;;  %v779_v43 = vpop.f32.mrb[17].mxu1 }
 0x14f   : > { %v652_v44 = vadd.f32 %v1650_v36, %v651_v42  ;;  %v780_v45 = vadd.f32 %v1650_v36, %v779_v43  ;;  %v1149_v46 = vpop.f32.mrb[18].mxu0  ;;  %v1181_v47 = vpop.f32.mrb[18].mxu1 }
 0x150   : > { %860 = vst [vmem:[%s1656_s25 + $0x90] sm:$0xff] %v660_v40  ;;  %892 = vst [vmem:[%s1656_s25 + $0x190] sm:$0xff] %v788_v41  ;;  %v663_v48 = vadd.f32 %v1149_v46, %v1650_v36  ;;  %v791_v49 = vadd.f32 %v1181_v47, %v1650_v36  ;;  %v654_v50 = vpop.f32.mrb[19].mxu0  ;;  %v782_v51 = vpop.f32.mrb[19].mxu1 }
 0x151   : > { %858 = vst [vmem:[%s1656_s25 + $0x80] sm:$0xff] %v652_v44  ;;  %890 = vst [vmem:[%s1656_s25 + $0x180] sm:$0xff] %v780_v45  ;;  %v655_v52 = vadd.f32 %v1650_v36, %v654_v50  ;;  %v783_v53 = vadd.f32 %v1650_v36, %v782_v51 }
 0x152   : > { %861 = vst [vmem:[%s1656_s25 + $0x98] sm:$0xff] %v663_v48  ;;  %893 = vst [vmem:[%s1656_s25 + $0x198] sm:$0xff] %v791_v49 }
 0x153   : > { %859 = vst [vmem:[%s1656_s25 + $0x88] sm:$0xff] %v655_v52  ;;  %891 = vst [vmem:[%s1656_s25 + $0x188] sm:$0xff] %v783_v53 }
 0x155   : > { %v1152_v54 = vpop.f32.mrb[20].mxu0  ;;  %v1184_v55 = vpop.f32.mrb[20].mxu1 }
 0x156   : > { %v676_v56 = vadd.f32 %v1152_v54, %v1650_v36  ;;  %v804_v57 = vadd.f32 %v1184_v55, %v1650_v36  ;;  %v667_v58 = vpop.f32.mrb[21].mxu0  ;;  %v795_v59 = vpop.f32.mrb[21].mxu1 }
 0x157   : > { %v668_v60 = vadd.f32 %v1650_v36, %v667_v58  ;;  %v796_v61 = vadd.f32 %v1650_v36, %v795_v59  ;;  %v1153_v62 = vpop.f32.mrb[22].mxu0  ;;  %v1185_v63 = vpop.f32.mrb[22].mxu1 }
 0x158   : > { %864 = vst [vmem:[%s1656_s25 + $0xb0] sm:$0xff] %v676_v56  ;;  %896 = vst [vmem:[%s1656_s25 + $0x1b0] sm:$0xff] %v804_v57  ;;  %v679_v0 = vadd.f32 %v1153_v62, %v1650_v36  ;;  %v807_v1 = vadd.f32 %v1185_v63, %v1650_v36  ;;  %v670_v2 = vpop.f32.mrb[23].mxu0  ;;  %v798_v3 = vpop.f32.mrb[23].mxu1 }
 0x159   : > { %862 = vst [vmem:[%s1656_s25 + $0xa0] sm:$0xff] %v668_v60  ;;  %894 = vst [vmem:[%s1656_s25 + $0x1a0] sm:$0xff] %v796_v61  ;;  %v671_v4 = vadd.f32 %v1650_v36, %v670_v2  ;;  %v799_v5 = vadd.f32 %v1650_v36, %v798_v3 }
 0x15a   : > { %865 = vst [vmem:[%s1656_s25 + $0xb8] sm:$0xff] %v679_v0  ;;  %897 = vst [vmem:[%s1656_s25 + $0x1b8] sm:$0xff] %v807_v1 }
 0x15b   : > { %863 = vst [vmem:[%s1656_s25 + $0xa8] sm:$0xff] %v671_v4  ;;  %895 = vst [vmem:[%s1656_s25 + $0x1a8] sm:$0xff] %v799_v5 }
 0x15d   : > { %v1156_v6 = vpop.f32.mrb[24].mxu0  ;;  %v1188_v7 = vpop.f32.mrb[24].mxu1 }
 0x15e   : > { %v692_v8 = vadd.f32 %v1156_v6, %v1650_v36  ;;  %v820_v9 = vadd.f32 %v1188_v7, %v1650_v36  ;;  %v683_v10 = vpop.f32.mrb[25].mxu0  ;;  %v811_v11 = vpop.f32.mrb[25].mxu1 }
 0x15f   : > { %v684_v12 = vadd.f32 %v1650_v36, %v683_v10  ;;  %v812_v13 = vadd.f32 %v1650_v36, %v811_v11  ;;  %v1157_v14 = vpop.f32.mrb[26].mxu0  ;;  %v1189_v15 = vpop.f32.mrb[26].mxu1 }
 0x160   : > { %868 = vst [vmem:[%s1656_s25 + $0xd0] sm:$0xff] %v692_v8  ;;  %900 = vst [vmem:[%s1656_s25 + $0x1d0] sm:$0xff] %v820_v9  ;;  %v695_v16 = vadd.f32 %v1157_v14, %v1650_v36  ;;  %v823_v17 = vadd.f32 %v1189_v15, %v1650_v36  ;;  %v686_v18 = vpop.f32.mrb[27].mxu0  ;;  %v814_v19 = vpop.f32.mrb[27].mxu1 }
 0x161   : > { %866 = vst [vmem:[%s1656_s25 + $0xc0] sm:$0xff] %v684_v12  ;;  %898 = vst [vmem:[%s1656_s25 + $0x1c0] sm:$0xff] %v812_v13  ;;  %v687_v20 = vadd.f32 %v1650_v36, %v686_v18  ;;  %v815_v21 = vadd.f32 %v1650_v36, %v814_v19 }
 0x162   : > { %869 = vst [vmem:[%s1656_s25 + $0xd8] sm:$0xff] %v695_v16  ;;  %901 = vst [vmem:[%s1656_s25 + $0x1d8] sm:$0xff] %v823_v17 }
 0x163   : > { %867 = vst [vmem:[%s1656_s25 + $0xc8] sm:$0xff] %v687_v20  ;;  %899 = vst [vmem:[%s1656_s25 + $0x1c8] sm:$0xff] %v815_v21 }
 0x165   : > { %v1160_v22 = vpop.f32.mrb[28].mxu0  ;;  %v1192_v23 = vpop.f32.mrb[28].mxu1 }
 0x166   : > { %v708_v24 = vadd.f32 %v1160_v22, %v1650_v36  ;;  %v836_v25 = vadd.f32 %v1192_v23, %v1650_v36  ;;  %v699_v26 = vpop.f32.mrb[29].mxu0  ;;  %v827_v27 = vpop.f32.mrb[29].mxu1 }
 0x167   : > { %v700_v28 = vadd.f32 %v1650_v36, %v699_v26  ;;  %v828_v29 = vadd.f32 %v1650_v36, %v827_v27  ;;  %v1161_v30 = vpop.f32.mrb[30].mxu0  ;;  %v1193_v31 = vpop.f32.mrb[30].mxu1 }
 0x168   : > { %872 = vst [vmem:[%s1656_s25 + $0xf0] sm:$0xff] %v708_v24  ;;  %904 = vst [vmem:[%s1656_s25 + $0x1f0] sm:$0xff] %v836_v25  ;;  %v711_v32 = vadd.f32 %v1161_v30, %v1650_v36  ;;  %v839_v33 = vadd.f32 %v1193_v31, %v1650_v36  ;;  %v702_v34 = vpop.f32.mrb[31].mxu0  ;;  %v830_v35 = vpop.f32.mrb[31].mxu1 }
 0x169   : > { %870 = vst [vmem:[%s1656_s25 + $0xe0] sm:$0xff] %v700_v28  ;;  %902 = vst [vmem:[%s1656_s25 + $0x1e0] sm:$0xff] %v828_v29  ;;  %v703_v37 = vadd.f32 %v1650_v36, %v702_v34  ;;  %v831_v38 = vadd.f32 %v1650_v36, %v830_v35 }
 0x16a   : > { %873 = vst [vmem:[%s1656_s25 + $0xf8] sm:$0xff] %v711_v32  ;;  %905 = vst [vmem:[%s1656_s25 + $0x1f8] sm:$0xff] %v839_v33 }
 0x16b   : > { %871 = vst [vmem:[%s1656_s25 + $0xe8] sm:$0xff] %v703_v37  ;;  %903 = vst [vmem:[%s1656_s25 + $0x1e8] sm:$0xff] %v831_v38 }
 0x16c   : > { %1370 = shalt.err (!%p1367_p11)
}
 0x16d   : > { %s1371_s10 = scalar_lea.hbm %s1779_s5, 8192  ;;  %s1375_s11 = scalar_lea.hbm %s1837_s3, 65536 }
 0x16e   : > { %p1372_p13 = scmp.ne.s32.totalorder %s1779_s5, %s1371_s10  ;;  %p1376_p6 = scmp.lt.u32.totalorder %s1779_s5, %s1837_s3 }
 0x16f   : > { %p1377_p9 = scmp.lt.u32.totalorder %s1375_s11, %s1371_s10  ;;  %p1379_p12 = scmp.lt.u32.totalorder %s1371_s10, %s1779_s5 }
 0x170   : > { %p1373_p0 = pnand %p1372_p13, %p1850_p1 }
 0x171   : > { %p1378_p10 = por %p1377_p9, %p1376_p6 }
 0x172   : > { %p1374_p5 = pneg %p1373_p0 }
 0x173   : > { %p1380_p2 = por %p1379_p12, %p1378_p10 }
 0x175   : > { %p1381_p3 = pnand %p1380_p2, %p1374_p5 }
 0x177   : > { %1384 = shalt.err (!%p1381_p3)
}
 0x178   : > { %s1434_s19 = smov 128   ;;  %s1435_s20 = smov 8  }
 0x179   : > { %1210 = dma.vmem_to_hbm [thread:$0]  (%p1850_p1), %s1781_s30, 8192, %s1779_s5, %s1793_s6, %s1434_s19, %s1434_s19, %s1435_s20  }
 0x17a PF: > { %p1227_p4 = scmp.ge.s32.totalorder %s1427_s15, 2  ;;  %s935_s25 = sand.u32 1, %s1415_s12  }
 0x17b   : > { %p1851_p7 = scmp.ne.s32.totalorder %s1842_s23, 0  ;;  %s936_s28 = scalar_lea.sflag [#allocation4], %s935_s25 }
 0x17d   : > { %p1220_p8 = pnand %p1227_p4, %p1851_p7 }
 0x17f   : > { %1410 = dma.done.wait (!%p1220_p8), %s936_s28, 8192  }
 0x180   : > { %1412 = vsyncadd (!%p1220_p8), %s936_s28, 4294959104  ;;  %p15_p11 = scmp.ge.s32.totalorder %s1481_s18, 10   ;;  %s1852_s12 = smov %s1419_s13 }
 0x181   : > { %s1853_s13 = smov %s1423_s14  ;;  %s1854_s14 = smov %s1492_s21 }
 0x182   : > { %s1855_s15 = smov %s1481_s18  ;;  %17 = sbr.rel (!%p15_p11) target bundleno = 5 (0x5), region = 76 }
 0x189   :  { %941 = vsyncpa [#allocation3], 1 }
 0x18a   :  { %943 = vsyncpa [#allocation3 + $0x1], 1 }
 0x18b   :  { %944 = vsyncpa [#allocation6], 1 }
 0x18c   :  { %945 = vsyncpa [#allocation4], 1 }
 0x18d   :  { %947 = vsyncpa [#allocation4 + $0x1], 1 }

</bundles_post_ra>
